<compile_context>
chip_gen: v6e
topology: v6e:2x2x1
jax: 0.10.0
libtpu: 0.0.40
codegen_flags: <defaults>
</compile_context>

<pallas_src>
import functools
import math

import jax
import jax.numpy as jnp
from jax.experimental import pallas as pl
from jax.experimental.pallas import tpu as pltpu


def _round_up(x, m):
    return (x + m - 1) // m * m


def _cdiv(a, b):
    return (a + b - 1) // b


@functools.lru_cache(maxsize=None)
def _vmem_limit_bytes():
    """Generation-aware VMEM limit: ~78% of physical per-core VMEM.

    ~100 MiB on 128 MiB parts (v5e/v6e), ~50 MiB on v7x (64 MiB/TC), leaving
    headroom for double-buffered tiles, f32 temporaries and Mosaic scratch.
    """
    default_cap = 128 * 1024 * 1024
    try:
        cap = int(getattr(pltpu.get_tpu_info(), "vmem_capacity_bytes", default_cap))
    except Exception:  # pragma: no cover - CPU / interpret fallbacks
        cap = default_cap
    return int(cap * 0.78)


def _pick_hidden_tile(h2p, th):
    """Largest multiple of 128 <= th that exactly divides h2p.

    Exact division keeps every hidden block fully valid (partial pipeline
    buffers would otherwise expose stale VMEM in the padded region).
    """
    th = max(128, min(_round_up(th, 128), h2p))
    best = 128
    for cand in range(128, th + 1, 128):
        if h2p % cand == 0:
            best = cand
    return best


def _swiglu_kernel(x_ref, w1_ref, b1_ref, w2_ref, b2_ref, w3_ref, b3_ref,
                   o_ref, acc_ref):
    """One (token-tile, hidden-tile) grid step of the fused SwiGLU FFN.

    x_ref  : (tm, gcp)   pipelined over token grid (constant over k)
    w1_ref : (gcp, th)   gate half of W12^T, hidden tile k
    b1_ref : (1,  th)    f32
    w2_ref : (gcp, th)   value half of W12^T, hidden tile k
    b2_ref : (1,  th)    f32
    w3_ref : (th, ecp)   W3^T, hidden tile k
    b3_ref : (1,  ecp)   f32 (constant block)
    o_ref  : (tm, ecp)   written at the last hidden tile
    acc_ref: (tm, ecp)   f32 accumulator scratch
    """
    k = pl.program_id(1)

    @pl.when(k == 0)
    def _():
        acc_ref[...] = jnp.zeros_like(acc_ref)

    # Cast the activation tile to the weight dtype (bf16 by default) so the
    # MXU runs at its full bf16 rate; accumulation stays in f32.
    x = x_ref[...].astype(w1_ref.dtype)

    x1 = jnp.dot(x, w1_ref[...], preferred_element_type=jnp.float32) + b1_ref[...]
    x2 = jnp.dot(x, w2_ref[...], preferred_element_type=jnp.float32) + b2_ref[...]

    # SiLU gate: sigmoid on the EUP, muls on the VPU -> hides under the MXU.
    hidden = (x1 * jax.nn.sigmoid(x1)) * x2

    acc_ref[...] += jnp.dot(hidden.astype(w3_ref.dtype), w3_ref[...],
                            preferred_element_type=jnp.float32)

    @pl.when(k == pl.num_programs(1) - 1)
    def _():
        o_ref[...] = (acc_ref[...] + b3_ref[...]).astype(o_ref.dtype)


def prepare_swiglu_params(w12, b12, w3, b3, *, dtype=jnp.bfloat16):
    """One-time conversion of PyTorch-convention SwiGLUFFN weights.

    w12: (e*ec, gc), b12: (e*ec,), w3: (ec, e*ec//2), b3: (ec,).

    Splits W12 into gate/value halves, transposes to row-major `x @ W`, and
    zero-pads gc, hidden/2 and ec up to multiples of 128 (exact: padded x
    columns hit zero weight rows, padded hidden columns give silu(0)*0 = 0,
    padded W3 rows/cols contribute 0).  Weights are cast to `dtype`
    (bf16 by default -> full-rate MXU); biases stay f32 and are added to the
    f32 accumulators.  Call ONCE outside the hot path and reuse the result.
    Returns (params, ec).
    """
    hidden, gc = w12.shape
    ec = w3.shape[0]
    h2 = hidden // 2
    gcp = _round_up(gc, 128)
    h2p = _round_up(h2, 128)
    ecp = _round_up(ec, 128)
    wdtype = w12.dtype if dtype is None else dtype

    w1t = jnp.zeros((gcp, h2p), wdtype).at[:gc, :h2].set(w12[:h2].T.astype(wdtype))
    w2t = jnp.zeros((gcp, h2p), wdtype).at[:gc, :h2].set(w12[h2:].T.astype(wdtype))
    b1 = jnp.zeros((1, h2p), jnp.float32).at[:, :h2].set(b12[:h2].astype(jnp.float32))
    b2 = jnp.zeros((1, h2p), jnp.float32).at[:, :h2].set(b12[h2:].astype(jnp.float32))
    w3t = jnp.zeros((h2p, ecp), wdtype).at[:h2, :ec].set(w3.T.astype(wdtype))
    b3p = jnp.zeros((1, ecp), jnp.float32).at[:, :ec].set(b3.astype(jnp.float32))
    return (w1t, b1, w2t, b2, w3t, b3p), ec


@functools.partial(jax.jit, static_argnames=("ec", "tm", "th"))
def swiglu_ffn(x, params, *, ec, tm=512, th=512):
    """x: [..., gc] -> [..., ec].  `params` from prepare_swiglu_params."""
    w1t, b1, w2t, b2, w3t, b3p = params
    gc = x.shape[-1]
    gcp, h2p = w1t.shape
    ecp = w3t.shape[1]

    if not (gc <= gcp < gc + 128):
        raise ValueError(
            f"x feature dim {gc} does not match prepared weights (padded gc={gcp})")

    lead = x.shape[:-1]
    n = math.prod(lead)
    x2d = x.reshape(n, gc)
    if gcp != gc:
        # One-time lane-alignment pad of the matmul K axis (zero weight rows).
        x2d = jnp.pad(x2d, ((0, 0), (0, gcp - gc)))

    # Token tile: big by default, sublane-packing aware (8 rows f32 / 16 bf16),
    # clamped to n.  Pallas masks the partial last block (all ops row-wise).
    packing = max(1, 4 // jnp.dtype(x.dtype).itemsize)
    sub = 8 * packing
    tm_eff = min(_round_up(tm, sub), _round_up(n, sub))
    # Ensure >= 2 token tiles when possible so v7x megacore (2 TCs) is used.
    if _cdiv(n, tm_eff) < 2 and n > sub:
        tm_eff = _round_up(_cdiv(n, 2), sub)
    num_i = _cdiv(n, tm_eff)

    # Hidden-axis split: bounds live f32 intermediates to (tm, th) and keeps
    # the weight working set pipelined instead of fully VMEM-resident.
    th_eff = _pick_hidden_tile(h2p, th)
    num_k = h2p // th_eff

    flops = 2 * n * gcp * h2p * 2 + 2 * n * h2p * ecp
    bytes_accessed = (x2d.size * x2d.dtype.itemsize
                      + sum(a.size * a.dtype.itemsize for a in params)
                      + n * ecp * jnp.dtype(x.dtype).itemsize)

    out2d = pl.pallas_call(
        _swiglu_kernel,
        out_shape=jax.ShapeDtypeStruct((n, ecp), x.dtype),
        grid_spec=pltpu.PrefetchScalarGridSpec(
            num_scalar_prefetch=0,
            grid=(num_i, num_k),
            in_specs=[
                pl.BlockSpec((tm_eff, gcp), lambda i, k: (i, 0)),   # tokens
                pl.BlockSpec((gcp, th_eff), lambda i, k: (0, k)),   # W1 tile
                pl.BlockSpec((1, th_eff), lambda i, k: (0, k)),     # b1 tile
                pl.BlockSpec((gcp, th_eff), lambda i, k: (0, k)),   # W2 tile
                pl.BlockSpec((1, th_eff), lambda i, k: (0, k)),     # b2 tile
                pl.BlockSpec((th_eff, ecp), lambda i, k: (k, 0)),   # W3 tile
                pl.BlockSpec((1, ecp), lambda i, k: (0, 0)),        # b3
            ],
            out_specs=pl.BlockSpec((tm_eff, ecp), lambda i, k: (i, 0)),
            scratch_shapes=[pltpu.VMEM((tm_eff, ecp), jnp.float32)],
        ),
        compiler_params=pltpu.CompilerParams(
            dimension_semantics=("parallel", "arbitrary"),
            vmem_limit_bytes=_vmem_limit_bytes(),
        ),
        cost_estimate=pl.CostEstimate(
            flops=flops,
            transcendentals=n * h2p,
            bytes_accessed=bytes_accessed,
        ),
    )(x2d, w1t, b1, w2t, b2, w3t, b3p)

    out = out2d if ecp == ec else out2d[:, :ec]
    return out.reshape(*lead, ec)


def _reference_f32(x, w12, b12, w3, b3):
    x12 = x @ w12.T + b12
    x1, x2 = jnp.split(x12, 2, axis=-1)
    hidden = jax.nn.silu(x1) * x2
    return hidden @ w3.T + b3


def _reference_bf16(x, w12, b12, w3, b3):
    """Mirror of the kernel numerics: bf16 operands, f32 accumulation."""
    xb = x.astype(jnp.bfloat16)
    w12b = w12.astype(jnp.bfloat16)
    w3b = w3.astype(jnp.bfloat16)
    x12 = jnp.dot(xb, w12b.T, preferred_element_type=jnp.float32) + b12
    x1, x2 = jnp.split(x12, 2, axis=-1)
    hidden = ((x1 * jax.nn.sigmoid(x1)) * x2).astype(jnp.bfloat16)
    return jnp.dot(hidden, w3b.T, preferred_element_type=jnp.float32) + b3


if __name__ == "__main__":
    # SwiGLUFFN(gc=32, ec=32, e=4): w12 = Linear(32, 128), w3 = Linear(64, 32)
    gc, ec, e = 32, 32, 4
    B, S = 2, 8  # batch=2, seq=8 tokens

    key = jax.random.PRNGKey(0)
    kx, k1, k2, k3, k4 = jax.random.split(key, 5)

    x = jax.random.normal(kx, (B, S, gc), dtype=jnp.float32)
    w12 = jax.random.normal(k1, (e * ec, gc), dtype=jnp.float32) * 0.05
    b12 = jax.random.normal(k2, (e * ec,), dtype=jnp.float32) * 0.05
    w3 = jax.random.normal(k3, (ec, e * ec // 2), dtype=jnp.float32) * 0.05
    b3 = jax.random.normal(k4, (ec,), dtype=jnp.float32) * 0.05

    # Hoisted one-time weight preparation (split/transpose/pad, bf16 cast).
    params, ec_out = prepare_swiglu_params(w12, b12, w3, b3)

    out = swiglu_ffn(x, params, ec=ec_out)
    out = jax.block_until_ready(out)

    ref_bf16 = _reference_bf16(x, w12, b12, w3, b3)
    ref_f32 = _reference_f32(x, w12, b12, w3, b3)

    assert out.shape == (B, S, ec), out.shape
    assert jnp.allclose(out, ref_bf16, atol=2e-3, rtol=2e-3), "mismatch vs bf16 reference"
    assert jnp.allclose(out, ref_f32, atol=5e-2, rtol=5e-2), "mismatch vs f32 reference"

    print("KERNEL_OK")
</pallas_src>

<mosaic_0001>
module attributes {stable_mosaic.version = 11 : i64} {
  func.func @_swiglu_kernel(%arg0: i32, %arg1: i32, %arg2: memref<8x128xf32, #tpu.memory_space<vmem>>, %arg3: memref<128x128xbf16, #tpu.memory_space<vmem>>, %arg4: memref<1x128xf32, #tpu.memory_space<vmem>>, %arg5: memref<128x128xbf16, #tpu.memory_space<vmem>>, %arg6: memref<1x128xf32, #tpu.memory_space<vmem>>, %arg7: memref<128x128xbf16, #tpu.memory_space<vmem>>, %arg8: memref<1x128xf32, #tpu.memory_space<vmem>>, %arg9: memref<8x128xf32, #tpu.memory_space<vmem>>, %arg10: memref<8x128xf32, #tpu.memory_space<vmem>>) attributes {dimension_semantics = [#tpu.dimension_semantics<parallel>, #tpu.dimension_semantics<arbitrary>], iteration_bounds = array<i64: 2, 1>, scalar_prefetch = 0 : i64, scratch_operands = 1 : i64, tpu.core_type = #tpu.core_type<tc>, window_params = [{transform_indices = @transform_0, window_bounds = array<i64: 8, 128>}, {transform_indices = @transform_1, window_bounds = array<i64: 128, 128>}, {transform_indices = @transform_2, window_bounds = array<i64: 1, 128>}, {transform_indices = @transform_3, window_bounds = array<i64: 128, 128>}, {transform_indices = @transform_4, window_bounds = array<i64: 1, 128>}, {transform_indices = @transform_5, window_bounds = array<i64: 128, 128>}, {pipeline_mode = #tpu.pipeline_mode<synchronous>, transform_indices = @transform_6, window_bounds = array<i64: 1, 128>}, {transform_indices = @transform_7, window_bounds = array<i64: 8, 128>}]} {
    %c0_i32 = arith.constant 0 : i32
    %0 = arith.cmpi eq, %arg1, %c0_i32 : i32
    %1 = arith.extui %0 : i1 to i32
    %c0_i32_0 = arith.constant 0 : i32
    %2 = arith.cmpi ne, %1, %c0_i32_0 : i32
    scf.if %2 {
      %cst_21 = arith.constant 0.000000e+00 : f32
      %31 = vector.broadcast %cst_21 : f32 to vector<8x128xf32>
      %c0_22 = arith.constant 0 : index
      %c0_23 = arith.constant 0 : index
      %32 = vector.load %arg10[%c0_22, %c0_23] : memref<8x128xf32, #tpu.memory_space<vmem>>, vector<8x128xf32>
      tpu.vector_store %arg10[%c0_22, %c0_23], %31 {strides = array<i32>} : memref<8x128xf32, #tpu.memory_space<vmem>>, vector<8x128xf32>,
    } else {
    }
    %c0 = arith.constant 0 : index
    %c0_1 = arith.constant 0 : index
    %3 = vector.load %arg2[%c0, %c0_1] : memref<8x128xf32, #tpu.memory_space<vmem>>, vector<8x128xf32>
    %4 = arith.truncf %3 : vector<8x128xf32> to vector<8x128xbf16>
    %c0_2 = arith.constant 0 : index
    %c0_3 = arith.constant 0 : index
    %5 = vector.load %arg3[%c0_2, %c0_3] : memref<128x128xbf16, #tpu.memory_space<vmem>>, vector<128x128xbf16>
    %cst = arith.constant dense<0.000000e+00> : vector<8x128xf32>
    %6 = tpu.matmul %4, %5, %cst {dimension_numbers = #tpu.dot_dimension_numbers<[1], [0], [0], [1], [0, 0, 1, 1], [], []>} : vector<8x128xbf16>, vector<128x128xbf16>, vector<8x128xf32> -> vector<8x128xf32>
    %c0_4 = arith.constant 0 : index
    %c0_5 = arith.constant 0 : index
    %7 = vector.load %arg4[%c0_4, %c0_5] : memref<1x128xf32, #tpu.memory_space<vmem>>, vector<1x128xf32>
    %8 = vector.broadcast %7 : vector<1x128xf32> to vector<8x128xf32>
    %9 = arith.addf %6, %8 : vector<8x128xf32>
    %c0_6 = arith.constant 0 : index
    %c0_7 = arith.constant 0 : index
    %10 = vector.load %arg5[%c0_6, %c0_7] : memref<128x128xbf16, #tpu.memory_space<vmem>>, vector<128x128xbf16>
    %cst_8 = arith.constant dense<0.000000e+00> : vector<8x128xf32>
    %11 = tpu.matmul %4, %10, %cst_8 {dimension_numbers = #tpu.dot_dimension_numbers<[1], [0], [0], [1], [0, 0, 1, 1], [], []>} : vector<8x128xbf16>, vector<128x128xbf16>, vector<8x128xf32> -> vector<8x128xf32>
    %c0_9 = arith.constant 0 : index
    %c0_10 = arith.constant 0 : index
    %12 = vector.load %arg6[%c0_9, %c0_10] : memref<1x128xf32, #tpu.memory_space<vmem>>, vector<1x128xf32>
    %13 = vector.broadcast %12 : vector<1x128xf32> to vector<8x128xf32>
    %14 = arith.addf %11, %13 : vector<8x128xf32>
    %15 = arith.negf %9 : vector<8x128xf32>
    %16 = math.exp %15 : vector<8x128xf32>
    %cst_11 = arith.constant 1.000000e+00 : f32
    %17 = vector.broadcast %cst_11 : f32 to vector<8x128xf32>
    %18 = arith.addf %17, %16 : vector<8x128xf32>
    %19 = arith.divf %17, %18 : vector<8x128xf32>
    %20 = arith.mulf %9, %19 : vector<8x128xf32>
    %21 = arith.mulf %20, %14 : vector<8x128xf32>
    %c0_12 = arith.constant 0 : index
    %c0_13 = arith.constant 0 : index
    %22 = vector.load %arg10[%c0_12, %c0_13] : memref<8x128xf32, #tpu.memory_space<vmem>>, vector<8x128xf32>
    %23 = arith.truncf %21 : vector<8x128xf32> to vector<8x128xbf16>
    %c0_14 = arith.constant 0 : index
    %c0_15 = arith.constant 0 : index
    %24 = vector.load %arg7[%c0_14, %c0_15] : memref<128x128xbf16, #tpu.memory_space<vmem>>, vector<128x128xbf16>
    %cst_16 = arith.constant dense<0.000000e+00> : vector<8x128xf32>
    %25 = tpu.matmul %23, %24, %cst_16 {dimension_numbers = #tpu.dot_dimension_numbers<[1], [0], [0], [1], [0, 0, 1, 1], [], []>} : vector<8x128xbf16>, vector<128x128xbf16>, vector<8x128xf32> -> vector<8x128xf32>
    %26 = arith.addf %22, %25 : vector<8x128xf32>
    %c0_17 = arith.constant 0 : index
    %c0_18 = arith.constant 0 : index
    %27 = vector.load %arg10[%c0_17, %c0_18] : memref<8x128xf32, #tpu.memory_space<vmem>>, vector<8x128xf32>
    tpu.vector_store %arg10[%c0_17, %c0_18], %26 {strides = array<i32>} : memref<8x128xf32, #tpu.memory_space<vmem>>, vector<8x128xf32>,
    %c0_i32_19 = arith.constant 0 : i32
    %28 = arith.cmpi eq, %arg1, %c0_i32_19 : i32
    %29 = arith.extui %28 : i1 to i32
    %c0_i32_20 = arith.constant 0 : i32
    %30 = arith.cmpi ne, %29, %c0_i32_20 : i32
    scf.if %30 {
      %c0_21 = arith.constant 0 : index
      %c0_22 = arith.constant 0 : index
      %31 = vector.load %arg10[%c0_21, %c0_22] : memref<8x128xf32, #tpu.memory_space<vmem>>, vector<8x128xf32>
      %c0_23 = arith.constant 0 : index
      %c0_24 = arith.constant 0 : index
      %32 = vector.load %arg8[%c0_23, %c0_24] : memref<1x128xf32, #tpu.memory_space<vmem>>, vector<1x128xf32>
      %33 = vector.broadcast %32 : vector<1x128xf32> to vector<8x128xf32>
      %34 = arith.addf %31, %33 : vector<8x128xf32>
      %c0_25 = arith.constant 0 : index
      %c0_26 = arith.constant 0 : index
      %35 = vector.load %arg9[%c0_25, %c0_26] : memref<8x128xf32, #tpu.memory_space<vmem>>, vector<8x128xf32>
      tpu.vector_store %arg9[%c0_25, %c0_26], %34 {strides = array<i32>} : memref<8x128xf32, #tpu.memory_space<vmem>>, vector<8x128xf32>,
    } else {
    }
    return
  }
  func.func @transform_0(%arg0: i32, %arg1: i32) -> (i32, i32) {
    %c0_i32 = arith.constant 0 : i32
    %c0_i32_0 = arith.constant 0 : i32
    return %arg0, %c0_i32 : i32, i32
  }
  func.func @transform_1(%arg0: i32, %arg1: i32) -> (i32, i32) {
    %c0_i32 = arith.constant 0 : i32
    %c0_i32_0 = arith.constant 0 : i32
    return %c0_i32, %arg1 : i32, i32
  }
  func.func @transform_2(%arg0: i32, %arg1: i32) -> (i32, i32) {
    %c0_i32 = arith.constant 0 : i32
    %c0_i32_0 = arith.constant 0 : i32
    return %c0_i32, %arg1 : i32, i32
  }
  func.func @transform_3(%arg0: i32, %arg1: i32) -> (i32, i32) {
    %c0_i32 = arith.constant 0 : i32
    %c0_i32_0 = arith.constant 0 : i32
    return %c0_i32, %arg1 : i32, i32
  }
  func.func @transform_4(%arg0: i32, %arg1: i32) -> (i32, i32) {
    %c0_i32 = arith.constant 0 : i32
    %c0_i32_0 = arith.constant 0 : i32
    return %c0_i32, %arg1 : i32, i32
  }
  func.func @transform_5(%arg0: i32, %arg1: i32) -> (i32, i32) {
    %c0_i32 = arith.constant 0 : i32
    %c0_i32_0 = arith.constant 0 : i32
    return %arg1, %c0_i32 : i32, i32
  }
  func.func @transform_6(%arg0: i32, %arg1: i32) -> (i32, i32) {
    %c0_i32 = arith.constant 0 : i32
    %c0_i32_0 = arith.constant 0 : i32
    %c0_i32_1 = arith.constant 0 : i32
    return %c0_i32, %c0_i32_0 : i32, i32
  }
  func.func @transform_7(%arg0: i32, %arg1: i32) -> (i32, i32) {
    %c0_i32 = arith.constant 0 : i32
    %c0_i32_0 = arith.constant 0 : i32
    return %arg0, %c0_i32 : i32, i32
  }
}

</mosaic_0001>

<bundles_post_ra>
// kernel: swiglu_ffn.1
= control target key start
LH: loop header
LB: loop body
LE: loop exit
PB: predicated region body
PF: predicated region fallthrough
CT: control target
= control target key end

     0   :  { %12 = vsyncpa [#allocation4], 0  ;;  %s1390_s0 = inlined_call_operand.vmem [shape: f32[16,128], index: 0, kind: input, shape index: {}]   ;;  %s1391_s1 = inlined_call_operand.hbm [shape: bf16[128,128], index: 1, kind: input, shape index: {}]   ;;  %s1392_s2 = inlined_call_operand.vmem [shape: f32[1,128], index: 2, kind: input, shape index: {}]   ;;  %s1393_s3 = inlined_call_operand.hbm [shape: bf16[128,128], index: 3, kind: input, shape index: {}]   ;;  %s1394_s4 = inlined_call_operand.vmem [shape: f32[1,128], index: 4, kind: input, shape index: {}]   ;;  %s1395_s5 = inlined_call_operand.hbm [shape: bf16[128,128], index: 5, kind: input, shape index: {}]   ;;  %s1396_s6 = inlined_call_operand.vmem [shape: f32[1,128], index: 6, kind: input, shape index: {}]   ;;  %s1397_s7 = inlined_call_operand.vmem [shape: f32[16,128], index: 7, kind: output, shape index: {}]  }
   0x1   :  { %13 = vsyncpa [#allocation6], 0  ;;  %s1239_s24 = smov 0   ;;  %s1241_s25 = smov 0  }
   0x2   :  { %s1243_s26 = smov 0  }
   0x3 LB: > { %s863_s27 = sadd.s32 4294967295, %s1190_s26   ;;  %p865_p0 = scmp.ge.s32.totalorder %s1190_s26, 1  ;;  %s1190_s26 = sphi %s1243_s26, %s19_s26   ;;  %s1186_s25 = sphi %s1241_s25, %s1403_s25   ;;  %s1182_s24 = sphi %s1239_s24, %s1402_s24  }
   0x4   : > { %p239_p1 = scmp.lt.s32.totalorder %s1190_s26, 3  ;;  %p1257_p2 = scmp.eq.s32.totalorder %s863_s27, 0 }
   0x5   : > { %s1192_s30 = smov [#allocation5]   ;;  %s31_s10 = sadd.s32 1, %s1186_s25 }
   0x6   : > { %p1261_p3 = pnand %p865_p0, %p239_p1  ;;  %s274_s8 = sshll.u32 %s1192_s30, 4  ;;  %s275_s8 = int_to_ptr.vmem [resolvable:$true] %s274_s8 }
   0x7   : > { %p1274_p6 = scmp.ge.s32.totalorder %s31_s10, 2  ;;  %s1193_s12 = smov [#allocation3]  }
   0x8   : > { %p1007_p4 = pneg %p1261_p3  ;;  %s253_s13 = sshll.u32 %s1193_s12, 4  ;;  %s254_s13 = int_to_ptr.vmem [resolvable:$true] %s253_s13 }
   0x9   : > { %s1093_s14 = scalar_lea.vmem %s275_s8, 1024  ;;  %p1101_p11 = scmp.lt.s32.totalorder %s275_s8, %s275_s8 }
   0xa   : > { %p1269_p5 = pnand %p1257_p2, %p1007_p4  ;;  %p1094_p8 = scmp.ne.s32.totalorder %s275_s8, %s1093_s14 }
   0xb   : > { %p1102_p12 = scmp.lt.s32.totalorder %s1093_s14, %s1093_s14 }
   0xc   : > { %p1084_p7 = pneg %p1269_p5 }
   0xd   : > { %p1103_p13 = por %p1102_p12, %p1101_p11 }
   0xe   : > { %p1096_p9 = pnand %p1094_p8, %p1084_p7 }
  0x10   : > { %p1097_p10 = pneg %p1096_p9 }
  0x12   : > { %p1104_p0 = pnand %p1103_p13, %p1097_p10 }
  0x14   : > { %1107 = shalt.err (!%p1104_p0)
}
  0x15   : > { %s1194_s15 = smov 64   ;;  %s1195_s16 = smov 4  }
  0x16   : > { %1013 = dma.hbm_to_vmem [thread:$0]  (!%p1269_p5), %s1393_s3, 1024, %s275_s8, [#allocation6], %s1194_s15, %s1194_s15, %s1195_s16  }
  0x17   : > { %s1405_s10 = smov (%p1274_p6, %s31_s10), 0  ;;  %s1119_s19 = scalar_lea.vmem %s254_s13, 1024 }
  0x18   : > { %p1120_p1 = scmp.ne.s32.totalorder %s254_s13, %s1119_s19  ;;  %p1127_p9 = scmp.lt.s32.totalorder %s254_s13, %s254_s13 }
  0x19   : > { %p1128_p10 = scmp.lt.s32.totalorder %s1119_s19, %s1119_s19 }
  0x1a   : > { %p1122_p4 = pnand %p1120_p1, %p1084_p7 }
  0x1b   : > { %p1129_p11 = por %p1128_p10, %p1127_p9 }
  0x1c   : > { %p1123_p8 = pneg %p1122_p4 }
  0x1e   : > { %p1130_p12 = pnand %p1129_p11, %p1123_p8 }
  0x20   : > { %1133 = shalt.err (!%p1130_p12)
}
  0x21   : > { %1010 = dma.hbm_to_vmem [thread:$0]  (!%p1269_p5), %s1391_s1, 1024, %s254_s13, [#allocation4], %s1194_s15, %s1194_s15, %s1195_s16  }
  0x22   : > { %s1196_s22 = smov [#allocation7]  }
  0x23   : > { %s296_s23 = sshll.u32 %s1196_s22, 4  ;;  %s297_s23 = int_to_ptr.vmem [resolvable:$true] %s296_s23 }
  0x24   : > { %s1145_s27 = scalar_lea.vmem %s297_s23, 1024  ;;  %p1153_p1 = scmp.lt.s32.totalorder %s297_s23, %s297_s23 }
  0x25   : > { %p1146_p6 = scmp.ne.s32.totalorder %s297_s23, %s1145_s27  ;;  %p1154_p4 = scmp.lt.s32.totalorder %s1145_s27, %s1145_s27 }
  0x27   : > { %p1148_p13 = pnand %p1146_p6, %p1084_p7  ;;  %p1155_p8 = por %p1154_p4, %p1153_p1 }
  0x29   : > { %p1149_p0 = pneg %p1148_p13 }
  0x2b   : > { %p1156_p9 = pnand %p1155_p8, %p1149_p0 }
  0x2d   : > { %1159 = shalt.err (!%p1156_p9)
}
  0x2e   : > { %1016 = dma.hbm_to_vmem [thread:$0]  (!%p1269_p5), %s1395_s5, 1024, %s297_s23, [#allocation6], %s1194_s15, %s1194_s15, %s1195_s16  }
  0x2f   : > { %322 = sbr.rel (%p1261_p3) target bundleno = 521 (0x209), region = 48 }
  0x34   : > { %1173 = dma.done.wait (%p1257_p2), [#allocation4], 1024  }
  0x35   : > { %1175 = vsyncadd (%p1257_p2), [#allocation4], 4294966272 }
  0x36   : > { %1177 = dma.done.wait (%p1257_p2), [#allocation6], 2048  }
  0x37   : > { %1179 = vsyncadd (%p1257_p2), [#allocation6], 4294965248  ;;  %v1197_v0 = vmov 0.0   ;;  %vm1198_vm0 = vmmov 0   ;;  %v1054_v1 = vld [vmem:[#allocation3 + $0x38] sm:$0xff]   ;;  %v1055_v2 = vld [vmem:[#allocation3 + $0x30] sm:$0xff]  }
  0x38   : > { %935 = vmatprep.subr.bf16.mxu0 %v1197_v0  ;;  %955 = vmatprep.subr.bf16.mxu1 %v1197_v0  ;;  %v1056_v3 = vld [vmem:[#allocation3 + $0x28] sm:$0xff]   ;;  %v1062_v4 = vld [vmem:[#allocation5 + $0x38] sm:$0xff]   ;;  %p366_p2 = scmp.lt.s32.totalorder %s1182_s24, 1  ;;  %v1057_v5 = vld [vmem:[#allocation3 + $0x20] sm:$0xff]  }
  0x39   : > { %951 = vmatprep.mubr.msk.bf16.mxu0 %vm1198_vm0, %v1197_v0  ;;  %971 = vmatprep.mubr.msk.bf16.mxu1 %vm1198_vm0, %v1197_v0  ;;  %v1063_v6 = vld [vmem:[#allocation5 + $0x30] sm:$0xff]   ;;  %v1058_v7 = vld [vmem:[#allocation3 + $0x18] sm:$0xff]   ;;  %v1064_v8 = vld [vmem:[#allocation5 + $0x28] sm:$0xff]  }
  0x3a   : > { %936 = vmatpush3.bf16.msra.mxu0 %v1054_v1  ;;  %956 = vmatpush3.bf16.msra.mxu1 %v1062_v4  ;;  %s1407_s24 = smov (!%p366_p2, %s1182_s24), 1  ;;  %v1059_v9 = vld [vmem:[#allocation3 + $0x10] sm:$0xff]   ;;  %v1065_v10 = vld [vmem:[#allocation5 + $0x20] sm:$0xff]   ;;  %v1060_v11 = vld [vmem:[#allocation3 + $0x8] sm:$0xff]  }
  0x3b   : > { %937 = vmatprep.subr.bf16.mxu0 %v1197_v0  ;;  %957 = vmatprep.subr.bf16.mxu1 %v1197_v0  ;;  %s876_s28 = sshll.u32 %s1407_s24, 3  ;;  %v1066_v12 = vld [vmem:[#allocation5 + $0x18] sm:$0xff]   ;;  %v1061_v13 = vld [vmem:[#allocation3] sm:$0xff]   ;;  %v1067_v15 = vld [vmem:[#allocation5 + $0x10] sm:$0xff]  }
  0x3c   : > { %s369_s11 = scalar_lea.vmem %s1390_s0, %s876_s28  ;;  %v1068_v17 = vld [vmem:[#allocation5 + $0x8] sm:$0xff]   ;;  %v1069_v18 = vld [vmem:[#allocation5] sm:$0xff]   ;;  %v1070_v19 = vld [vmem:[#allocation7 + $0x38] sm:$0xff]   ;;  %s380_s20 = scalar_lea.vmem %s1397_s7, %s876_s28 }
  0x3d   : > { %v387_v14 = vld [vmem:[%s369_s11] sm:$0xff]  ;;  %v1071_v20 = vld [vmem:[#allocation7 + $0x30] sm:$0xff]   ;;  %v1072_v21 = vld [vmem:[#allocation7 + $0x28] sm:$0xff]  }
  0x3e   : > { %938 = vmatpush3.bf16.msra.mxu0 %v1055_v2  ;;  %958 = vmatpush3.bf16.msra.mxu1 %v1063_v6  ;;  %v388_v16 = vpack.c.bf16 %v387_v14, %v387_v14  ;;  %v1073_v22 = vld [vmem:[#allocation7 + $0x20] sm:$0xff]   ;;  %v1074_v23 = vld [vmem:[#allocation7 + $0x18] sm:$0xff]   ;;  %v1075_v24 = vld [vmem:[#allocation7 + $0x10] sm:$0xff]  }
  0x3f   : > { %939 = vmatprep.subr.bf16.mxu0 %v1197_v0  ;;  %959 = vmatprep.subr.bf16.mxu1 %v1197_v0  ;;  %v1076_v25 = vld [vmem:[#allocation7 + $0x8] sm:$0xff]   ;;  %v1077_v26 = vld [vmem:[#allocation7] sm:$0xff]  }
  0x40   : > { %v878_v27 = vld [vmem:[%s1392_s2] ss:$0 sm:$0xff] }
  0x41   : > { %v887_v40 = vld [vmem:[%s1394_s4] ss:$0 sm:$0xff] }
  0x42   : > { %940 = vmatpush3.bf16.msra.mxu0 %v1056_v3  ;;  %960 = vmatpush3.bf16.msra.mxu1 %v1064_v8  ;;  %v905_v46 = vld [vmem:[%s1396_s6] ss:$0 sm:$0xff] }
  0x43   : > { %941 = vmatprep.subr.bf16.mxu0 %v1197_v0  ;;  %961 = vmatprep.subr.bf16.mxu1 %v1197_v0 }
  0x46   : > { %942 = vmatpush3.bf16.msra.mxu0 %v1057_v5  ;;  %962 = vmatpush3.bf16.msra.mxu1 %v1065_v10 }
  0x47   : > { %943 = vmatprep.subr.bf16.mxu0 %v1197_v0  ;;  %963 = vmatprep.subr.bf16.mxu1 %v1197_v0 }
  0x4a   : > { %944 = vmatpush3.bf16.msra.mxu0 %v1058_v7  ;;  %964 = vmatpush3.bf16.msra.mxu1 %v1066_v12 }
  0x4b   : > { %945 = vmatprep.subr.bf16.mxu0 %v1197_v0  ;;  %965 = vmatprep.subr.bf16.mxu1 %v1197_v0 }
  0x4e   : > { %946 = vmatpush3.bf16.msra.mxu0 %v1059_v9  ;;  %966 = vmatpush3.bf16.msra.mxu1 %v1067_v15 }
  0x4f   : > { %947 = vmatprep.subr.bf16.mxu0 %v1197_v0  ;;  %967 = vmatprep.subr.bf16.mxu1 %v1197_v0 }
  0x52   : > { %948 = vmatpush3.bf16.msra.mxu0 %v1060_v11  ;;  %968 = vmatpush3.bf16.msra.mxu1 %v1068_v17 }
  0x53   : > { %949 = vmatprep.subr.bf16.mxu0 %v1197_v0  ;;  %969 = vmatprep.subr.bf16.mxu1 %v1197_v0 }
  0x56   : > { %950 = vmatpush3.bf16.msra.mxu0 %v1061_v13  ;;  %970 = vmatpush3.bf16.msra.mxu1 %v1069_v18 }
  0x57   : > { %975 = vmatprep.subr.bf16.mxu0 %v1197_v0 }
  0x59   : > { %952 = vmatmul.mubr.bf16.vlgmr.msra.gmra.mxu0 %v388_v16  ;;  %972 = vmatmul.mubr.bf16.vlgmr.msra.gmra.mxu1 %v388_v16 }
  0x5a   : > { %991 = vmatprep.mubr.msk.bf16.mxu0 %vm1198_vm0, %v1197_v0  ;;  %976 = vmatpush3.bf16.msra.mxu0 %v1070_v19 }
  0x5b   : > { %977 = vmatprep.subr.bf16.mxu0 %v1197_v0 }
  0x5e   : > { %978 = vmatpush3.bf16.msra.mxu0 %v1071_v20 }
  0x5f   : > { %979 = vmatprep.subr.bf16.mxu0 %v1197_v0 }
  0x62   : > { %980 = vmatpush3.bf16.msra.mxu0 %v1072_v21 }
  0x63   : > { %981 = vmatprep.subr.bf16.mxu0 %v1197_v0 }
  0x66   : > { %982 = vmatpush3.bf16.msra.mxu0 %v1073_v22 }
  0x67   : > { %983 = vmatprep.subr.bf16.mxu0 %v1197_v0 }
  0x6a   : > { %984 = vmatpush3.bf16.msra.mxu0 %v1074_v23 }
  0x6b   : > { %985 = vmatprep.subr.bf16.mxu0 %v1197_v0 }
  0x6e   : > { %986 = vmatpush3.bf16.msra.mxu0 %v1075_v24 }
  0x6f   : > { %987 = vmatprep.subr.bf16.mxu0 %v1197_v0 }
  0x72   : > { %988 = vmatpush3.bf16.msra.mxu0 %v1076_v25 }
  0x73   : > { %989 = vmatprep.subr.bf16.mxu0 %v1197_v0 }
  0x76   : > { %990 = vmatpush3.bf16.msra.mxu0 %v1077_v26 }
 0x119   : > { %v494_v28 = vpop.f32.mrf.mxu0  ;;  %v605_v34 = vpop.f32.mrf.mxu1 }
 0x11a   : > { %v495_v29 = vadd.f32 %v878_v27, %v494_v28  ;;  %v606_v41 = vadd.f32 %v887_v40, %v605_v34 }
 0x11b   : > { %v953_v30 = vpop.f32.mrf.mxu0  ;;  %v973_v35 = vpop.f32.mrf.mxu1 }
 0x11c   : > { %v896_v31 = vmul.f32 -1.442695, %v495_v29 }
 0x11d   : > { %v497_v32 = vpop.f32.mrf.mxu0  ;;  %v608_v36 = vpop.f32.mrf.mxu1 }
 0x11e   : > { %1078 = vpow2.f32 %v896_v31 }
 0x11f   : > { %v954_v33 = vpop.f32.mrf.mxu0  ;;  %v974_v37 = vpop.f32.mrf.mxu1 }
 0x12b   : > { %v1079_v38 = vpop.eup %1078 }
 0x12c   : > { %v614_v39 = vadd.f32 1.0, %v1079_v38 }
 0x12e   : > { %1080 = vrcp.f32 %v614_v39 }
 0x13b   : > { %v1081_v42 = vpop.eup %1080 }
 0x13c   : > { %v617_v43 = vmul.f32 %v1081_v42, %v495_v29 }
 0x13e   : > { %v618_v44 = vmul.f32 %v617_v43, %v606_v41 }
 0x140   : > { %v620_v45 = vpack.c.bf16 %v618_v44, %v618_v44 }
 0x142   : > { %992 = vmatmul.mubr.bf16.vlgmr.msra.gmra.mxu0 %v620_v45 }
 0x202   : > { %v719_v47 = vpop.f32.mrf.mxu0 }
 0x203   : > { %v738_v48 = vadd.f32 %v905_v46, %v719_v47 }
 0x204   : > { %v993_v49 = vpop.f32.mrf.mxu0 }
 0x205   : > { %739 = vst [vmem:[%s380_s20] sm:$0xff] %v738_v48 }
 0x206   : > { %v722_v50 = vpop.f32.mrf.mxu0 }
 0x208   : > { %v994_v51 = vpop.f32.mrf.mxu0 }
 0x209 PF: > { %s19_s26 = sadd.s32 1, %s1190_s26   ;;  %s1402_s24 = smov %s1186_s25 }
 0x20a   : > { %p16_p3 = scmp.ge.s32.totalorder %s19_s26, 4   ;;  %s1403_s25 = smov %s1405_s10 }
 0x20c   :  { %18 = sbr.rel (!%p16_p3) target bundleno = 3 (0x3), region = 108 }
 0x211   :  { %759 = vsyncpa [#allocation4], 1 }
 0x212   :  { %761 = vsyncpa [#allocation4 + $0x1], 1 }
 0x213   :  { %762 = vsyncpa [#allocation6], 1 }

</bundles_post_ra>
